<compile_context>
chip_gen: v7x
topology: tpu7x:2x2x1
jax: 0.10.0
libtpu: 0.0.40
codegen_flags: <defaults>
</compile_context>

<pallas_src>
import functools

import jax
import jax.numpy as jnp
from jax.experimental import pallas as pl
from jax.experimental.pallas import tpu as pltpu


def _round_up(v, m):
    return (v + m - 1) // m * m


# ----------------------------- Pallas kernel --------------------------------

def _fused_gcn_kernel(adj_ref, x_ref, *refs, num_layers):
    """Fused MyGCN layer stack.

    adj_ref : (Np, Np)            bf16  dense softmax-weighted adjacency (target-major)
    x_ref   : (Np, B*Fin0)        f32   node features with batch folded into lanes
    refs    : (w_0, b_0, ..., w_{L-1}, b_{L-1}, out_ref)
       w_l  : (B*Fin_l, B*Fout_l[padded])  bf16  block-diagonal kron(I_B, W_l)
       b_l  : (1, B*Fout_l[padded])        f32   bias tiled over the batch
    out_ref : (Np, lane_out)      f32   lane_out = B*Fout_last rounded up to 128k
    """
    out_ref = refs[-1]
    a = adj_ref[...]                         # bf16, reused across all layers
    h = x_ref[...].astype(jnp.float32)       # (Np, B*Fin0) f32 activations

    for l in range(num_layers):
        w = refs[2 * l][...]                 # bf16 block-diagonal weight
        b = refs[2 * l + 1][...]             # f32 tiled bias (1, B*Fout)
        # projection:  Hp = H @ kron(I_B, W)   -> (Np, B*Fout)
        hp = jnp.dot(h.astype(jnp.bfloat16), w,
                     preferred_element_type=jnp.float32)
        # aggregation: out = A @ Hp            -> (Np, B*Fout)
        agg = jnp.dot(a, hp.astype(jnp.bfloat16),
                      preferred_element_type=jnp.float32)
        h = agg + b                          # f32 epilogue
        if l < num_layers - 1:
            h = jnp.maximum(h, 0.0)          # ReLU on hidden layers only

    out_ref[...] = h.astype(out_ref.dtype)


def mygcn_fused_call(x, adj, params):
    """Run the fused GCN stack.

    x:      (B, N, Fin0) f32 node features
    adj:    (N, N)       f32 dense weighted adjacency, adj[i, j] = w_{j->i}
    params: list of (W (Fin, Fout) f32, b (Fout,) f32)
    returns (B, N, Fout_last) f32
    """
    B, N, Fin0 = x.shape
    L = len(params)
    Fout_last = params[-1][0].shape[1]

    Np = _round_up(N, 8)

    # Fold batch into the lane axis: (B, N, F) -> (N, B*F).
    xt = jnp.transpose(x, (1, 0, 2)).reshape(N, B * Fin0).astype(jnp.float32)
    if Np != N:
        xt = jnp.pad(xt, ((0, Np - N), (0, 0)))
        adj = jnp.pad(adj, ((0, Np - N), (0, Np - N)))
    adj_bf16 = adj.astype(jnp.bfloat16)

    # Block-diagonal weights / tiled biases; pad final output lanes to >=128.
    out_lanes = _round_up(max(B * Fout_last, 128), 128)
    eye_b = jnp.eye(B, dtype=jnp.float32)

    flat_wb = []
    in_specs = [
        pl.BlockSpec((Np, Np), lambda i: (0, 0)),         # adjacency (shared)
        pl.BlockSpec((Np, B * Fin0), lambda i: (0, 0)),   # folded features
    ]
    for l, (w, b) in enumerate(params):
        wblk = jnp.kron(eye_b, w)            # (B*Fin, B*Fout)
        bblk = jnp.tile(b, B)                # (B*Fout,)
        if l == L - 1:
            pad = out_lanes - wblk.shape[1]
            wblk = jnp.pad(wblk, ((0, 0), (0, pad)))
            bblk = jnp.pad(bblk, ((0, pad),))
        wblk = wblk.astype(jnp.bfloat16)
        bblk = bblk.reshape(1, -1).astype(jnp.float32)
        flat_wb += [wblk, bblk]
        in_specs.append(pl.BlockSpec(wblk.shape, lambda i: (0, 0)))
        in_specs.append(pl.BlockSpec(bblk.shape, lambda i: (0, 0)))

    kernel = functools.partial(_fused_gcn_kernel, num_layers=L)

    # TODO(synk): for large N the dense (N, N) adjacency must be tiled over a
    # (row-tile, reduction) grid with a VMEM accumulator (or replaced with a
    # scalar-prefetch sparse gather) to fit v7x's 64 MiB VMEM; at these sizes
    # everything fits in a single block, so grid=(1,) is the fastest layout.
    out = pl.pallas_call(
        kernel,
        out_shape=jax.ShapeDtypeStruct((Np, out_lanes), jnp.float32),
        grid_spec=pltpu.PrefetchScalarGridSpec(
            num_scalar_prefetch=0,
            grid=(1,),
            in_specs=in_specs,
            out_specs=pl.BlockSpec((Np, out_lanes), lambda i: (0, 0)),
        ),
        compiler_params=pltpu.CompilerParams(
            dimension_semantics=("arbitrary",)),
    )(adj_bf16, xt, *flat_wb)

    # Un-fold: (Np, out_lanes) -> (N, B*Fout_last) -> (B, N, Fout_last).
    out = out[:N, :B * Fout_last]
    return out.reshape(N, B, Fout_last).transpose(1, 0, 2)


# ----------------------------- JAX glue --------------------------------------

def scatter_softmax(logits, index, num_segments):
    """torch_geometric.utils.softmax: softmax of `logits` grouped by `index`."""
    seg_max = jax.ops.segment_max(logits, index, num_segments=num_segments)
    seg_max = jnp.where(jnp.isfinite(seg_max), seg_max, 0.0)
    ex = jnp.exp(logits - seg_max[index])
    denom = jax.ops.segment_sum(ex, index, num_segments=num_segments)
    return ex / denom[index]


def build_dense_adjacency(edge_index, edge_weight, num_nodes):
    """A[i, j] = sum of edge_weight over edges (j -> i)."""
    src = edge_index[0]
    tgt = edge_index[1]
    adj = jnp.zeros((num_nodes, num_nodes), dtype=jnp.float32)
    adj = adj.at[tgt, src].add(edge_weight)
    return adj


def init_mygcn_params(key, sizes):
    """Deterministic parameter init: lin ~ U(-0.1, 0.1) per layer, bias = 0."""
    params = []
    for s in range(len(sizes) - 1):
        key, sub = jax.random.split(key)
        w = jax.random.uniform(sub, (sizes[s], sizes[s + 1]),
                               dtype=jnp.float32, minval=-0.1, maxval=0.1)
        b = jnp.zeros((sizes[s + 1],), dtype=jnp.float32)
        params.append((w, b))
    return params


def mygcn_forward(x, edge_index, params, edge_weight_logits=None):
    """x: (N, F) or (B, N, F); edge_index: (2, E) int32."""
    if x.ndim == 2:
        x = x[None, ...]
    num_nodes = x.shape[1]
    E = edge_index.shape[1]
    if edge_weight_logits is None:
        edge_weight_logits = jnp.ones((E,), dtype=jnp.float32)
    edge_weight = scatter_softmax(edge_weight_logits, edge_index[1], num_nodes)
    adj = build_dense_adjacency(edge_index, edge_weight, num_nodes)
    return mygcn_fused_call(x, adj, params)


def mygcn_reference(x, adj, params):
    """Pure-JAX f32 reference: out = A @ (X @ W) + b, ReLU on hidden layers."""
    h = x
    L = len(params)
    for l, (w, b) in enumerate(params):
        h = jnp.einsum('ij,bjf->bif', adj,
                       jnp.einsum('bnf,fg->bng', h, w)) + b
        if l < L - 1:
            h = jnp.maximum(h, 0.0)
    return h


# ----------------------------- demo / test ----------------------------------

if __name__ == "__main__":
    key = jax.random.PRNGKey(0)

    B, N = 2, 8                 # batch of graphs (same structure), nodes per graph
    sizes = [16, 32, 8]         # in_dim -> hidden -> out_dim

    # Node features
    key, kx = jax.random.split(key)
    x = jax.random.normal(kx, (B, N, sizes[0]), dtype=jnp.float32)

    # Fixed small directed graph: ring + a few extra edges (add_self_loops=False,
    # normalize=False, matching MyGCN defaults).
    src = jnp.array([0, 1, 2, 3, 4, 5, 6, 7, 0, 2, 4, 6], dtype=jnp.int32)
    tgt = jnp.array([1, 2, 3, 4, 5, 6, 7, 0, 4, 6, 0, 2], dtype=jnp.int32)
    edge_index = jnp.stack([src, tgt], axis=0)   # (2, E)

    key, kp = jax.random.split(key)
    params = init_mygcn_params(kp, sizes)

    out = mygcn_forward(x, edge_index, params)
    out = jax.block_until_ready(out)

    # Validate the bf16-operand / f32-accum kernel against a pure f32 reference.
    edge_weight = scatter_softmax(jnp.ones((edge_index.shape[1],), jnp.float32),
                                  edge_index[1], N)
    adj = build_dense_adjacency(edge_index, edge_weight, N)
    ref = mygcn_reference(x, adj, params)

    assert out.shape == (B, N, sizes[-1]), out.shape
    assert jnp.all(jnp.isfinite(out))
    assert jnp.allclose(out, ref, atol=5e-2, rtol=5e-2), \
        float(jnp.max(jnp.abs(out - ref)))
    print("KERNEL_OK")
</pallas_src>

<mosaic_0001>
module attributes {stable_mosaic.version = 11 : i64} {
  func.func @_fused_gcn_kernel(%arg0: i32, %arg1: memref<8x8xbf16, #tpu.memory_space<vmem>>, %arg2: memref<8x32xf32, #tpu.memory_space<vmem>>, %arg3: memref<32x64xbf16, #tpu.memory_space<vmem>>, %arg4: memref<1x64xf32, #tpu.memory_space<vmem>>, %arg5: memref<64x128xbf16, #tpu.memory_space<vmem>>, %arg6: memref<1x128xf32, #tpu.memory_space<vmem>>, %arg7: memref<8x128xf32, #tpu.memory_space<vmem>>) attributes {dimension_semantics = [#tpu.dimension_semantics<arbitrary>], iteration_bounds = array<i64: 1>, scalar_prefetch = 0 : i64, scratch_operands = 0 : i64, tpu.core_type = #tpu.core_type<tc>, window_params = [{pipeline_mode = #tpu.pipeline_mode<synchronous>, transform_indices = @transform_0, window_bounds = array<i64: 8, 8>}, {pipeline_mode = #tpu.pipeline_mode<synchronous>, transform_indices = @transform_1, window_bounds = array<i64: 8, 32>}, {pipeline_mode = #tpu.pipeline_mode<synchronous>, transform_indices = @transform_2, window_bounds = array<i64: 32, 64>}, {pipeline_mode = #tpu.pipeline_mode<synchronous>, transform_indices = @transform_3, window_bounds = array<i64: 1, 64>}, {pipeline_mode = #tpu.pipeline_mode<synchronous>, transform_indices = @transform_4, window_bounds = array<i64: 64, 128>}, {pipeline_mode = #tpu.pipeline_mode<synchronous>, transform_indices = @transform_5, window_bounds = array<i64: 1, 128>}, {pipeline_mode = #tpu.pipeline_mode<synchronous>, transform_indices = @transform_6, window_bounds = array<i64: 8, 128>}]} {
    %c0 = arith.constant 0 : index
    %c0_0 = arith.constant 0 : index
    %0 = vector.load %arg1[%c0, %c0_0] : memref<8x8xbf16, #tpu.memory_space<vmem>>, vector<8x8xbf16>
    %c0_1 = arith.constant 0 : index
    %c0_2 = arith.constant 0 : index
    %1 = vector.load %arg2[%c0_1, %c0_2] : memref<8x32xf32, #tpu.memory_space<vmem>>, vector<8x32xf32>
    %c0_3 = arith.constant 0 : index
    %c0_4 = arith.constant 0 : index
    %2 = vector.load %arg3[%c0_3, %c0_4] : memref<32x64xbf16, #tpu.memory_space<vmem>>, vector<32x64xbf16>
    %c0_5 = arith.constant 0 : index
    %c0_6 = arith.constant 0 : index
    %3 = vector.load %arg4[%c0_5, %c0_6] : memref<1x64xf32, #tpu.memory_space<vmem>>, vector<1x64xf32>
    %4 = arith.truncf %1 : vector<8x32xf32> to vector<8x32xbf16>
    %cst = arith.constant dense<0.000000e+00> : vector<8x64xf32>
    %5 = tpu.matmul %4, %2, %cst {dimension_numbers = #tpu.dot_dimension_numbers<[1], [0], [0], [1], [0, 0, 1, 1], [], []>} : vector<8x32xbf16>, vector<32x64xbf16>, vector<8x64xf32> -> vector<8x64xf32>
    %6 = arith.truncf %5 : vector<8x64xf32> to vector<8x64xbf16>
    %cst_7 = arith.constant dense<0.000000e+00> : vector<8x64xf32>
    %7 = tpu.matmul %0, %6, %cst_7 {dimension_numbers = #tpu.dot_dimension_numbers<[1], [0], [0], [1], [0, 0, 1, 1], [], []>} : vector<8x8xbf16>, vector<8x64xbf16>, vector<8x64xf32> -> vector<8x64xf32>
    %8 = vector.broadcast %3 : vector<1x64xf32> to vector<8x64xf32>
    %9 = arith.addf %7, %8 : vector<8x64xf32>
    %cst_8 = arith.constant 0.000000e+00 : f32
    %10 = vector.broadcast %cst_8 : f32 to vector<8x64xf32>
    %11 = arith.maximumf %9, %10 : vector<8x64xf32>
    %c0_9 = arith.constant 0 : index
    %c0_10 = arith.constant 0 : index
    %12 = vector.load %arg5[%c0_9, %c0_10] : memref<64x128xbf16, #tpu.memory_space<vmem>>, vector<64x128xbf16>
    %c0_11 = arith.constant 0 : index
    %c0_12 = arith.constant 0 : index
    %13 = vector.load %arg6[%c0_11, %c0_12] : memref<1x128xf32, #tpu.memory_space<vmem>>, vector<1x128xf32>
    %14 = arith.truncf %11 : vector<8x64xf32> to vector<8x64xbf16>
    %cst_13 = arith.constant dense<0.000000e+00> : vector<8x128xf32>
    %15 = tpu.matmul %14, %12, %cst_13 {dimension_numbers = #tpu.dot_dimension_numbers<[1], [0], [0], [1], [0, 0, 1, 1], [], []>} : vector<8x64xbf16>, vector<64x128xbf16>, vector<8x128xf32> -> vector<8x128xf32>
    %16 = arith.truncf %15 : vector<8x128xf32> to vector<8x128xbf16>
    %cst_14 = arith.constant dense<0.000000e+00> : vector<8x128xf32>
    %17 = tpu.matmul %0, %16, %cst_14 {dimension_numbers = #tpu.dot_dimension_numbers<[1], [0], [0], [1], [0, 0, 1, 1], [], []>} : vector<8x8xbf16>, vector<8x128xbf16>, vector<8x128xf32> -> vector<8x128xf32>
    %18 = vector.broadcast %13 : vector<1x128xf32> to vector<8x128xf32>
    %19 = arith.addf %17, %18 : vector<8x128xf32>
    %c0_15 = arith.constant 0 : index
    %c0_16 = arith.constant 0 : index
    %20 = vector.load %arg7[%c0_15, %c0_16] : memref<8x128xf32, #tpu.memory_space<vmem>>, vector<8x128xf32>
    tpu.vector_store %arg7[%c0_15, %c0_16], %19 {strides = array<i32>} : memref<8x128xf32, #tpu.memory_space<vmem>>, vector<8x128xf32>,
    return
  }
  func.func @transform_0(%arg0: i32) -> (i32, i32) {
    %c0_i32 = arith.constant 0 : i32
    %c0_i32_0 = arith.constant 0 : i32
    %c0_i32_1 = arith.constant 0 : i32
    return %c0_i32, %c0_i32_0 : i32, i32
  }
  func.func @transform_1(%arg0: i32) -> (i32, i32) {
    %c0_i32 = arith.constant 0 : i32
    %c0_i32_0 = arith.constant 0 : i32
    %c0_i32_1 = arith.constant 0 : i32
    return %c0_i32, %c0_i32_0 : i32, i32
  }
  func.func @transform_2(%arg0: i32) -> (i32, i32) {
    %c0_i32 = arith.constant 0 : i32
    %c0_i32_0 = arith.constant 0 : i32
    %c0_i32_1 = arith.constant 0 : i32
    return %c0_i32, %c0_i32_0 : i32, i32
  }
  func.func @transform_3(%arg0: i32) -> (i32, i32) {
    %c0_i32 = arith.constant 0 : i32
    %c0_i32_0 = arith.constant 0 : i32
    %c0_i32_1 = arith.constant 0 : i32
    return %c0_i32, %c0_i32_0 : i32, i32
  }
  func.func @transform_4(%arg0: i32) -> (i32, i32) {
    %c0_i32 = arith.constant 0 : i32
    %c0_i32_0 = arith.constant 0 : i32
    %c0_i32_1 = arith.constant 0 : i32
    return %c0_i32, %c0_i32_0 : i32, i32
  }
  func.func @transform_5(%arg0: i32) -> (i32, i32) {
    %c0_i32 = arith.constant 0 : i32
    %c0_i32_0 = arith.constant 0 : i32
    %c0_i32_1 = arith.constant 0 : i32
    return %c0_i32, %c0_i32_0 : i32, i32
  }
  func.func @transform_6(%arg0: i32) -> (i32, i32) {
    %c0_i32 = arith.constant 0 : i32
    %c0_i32_0 = arith.constant 0 : i32
    %c0_i32_1 = arith.constant 0 : i32
    return %c0_i32, %c0_i32_0 : i32, i32
  }
}

</mosaic_0001>

<bundles_post_ra>
// kernel: tpu_custom_call.1
= control target key start
LH: loop header
LB: loop body
LE: loop exit
PB: predicated region body
PF: predicated region fallthrough
CT: control target
= control target key end

     0   :  { %11 = vsyncpa [#allocation3], 0  ;;  %s649_s0 = inlined_call_operand.hbm [shape: bf16[8,8], index: 0, kind: input, shape index: {}]   ;;  %s650_s1 = inlined_call_operand.hbm [shape: f32[8,32], index: 1, kind: input, shape index: {}]   ;;  %s651_s2 = inlined_call_operand.hbm [shape: bf16[32,64], index: 2, kind: input, shape index: {}]   ;;  %s652_s3 = inlined_call_operand.vmem [shape: f32[1,64], index: 3, kind: input, shape index: {}]   ;;  %s653_s4 = inlined_call_operand.hbm [shape: bf16[64,128], index: 4, kind: input, shape index: {}]   ;;  %s654_s5 = inlined_call_operand.vmem [shape: f32[1,128], index: 5, kind: input, shape index: {}]   ;;  %s655_s6 = inlined_call_operand.hbm [shape: f32[8,128], index: 6, kind: output, shape index: {}]  }
   0x1   :  { %12 = vsyncpa [#allocation6], 0 }
   0x2   :  { %13 = vsyncpa [#allocation9], 0 }
   0x3   :  { %14 = vsyncpa [#allocation4], 0  ;;  %s531_s21 = smov [#allocation5]   ;;  %s532_s23 = smov [#allocation2]  }
   0x4   :  { %s31_s22 = sshll.u32 %s531_s21, 4  ;;  %s21_s24 = sshll.u32 %s532_s23, 4  ;;  %s32_s22 = int_to_ptr.vmem [resolvable:$true] %s31_s22  ;;  %s22_s24 = int_to_ptr.vmem [resolvable:$true] %s21_s24 }
   0x5   :  { %s413_s27 = scalar_lea.hbm %s650_s1, 128 }
   0x6   :  { %p414_p0 = scmp.ne.s32.totalorder %s650_s1, %s413_s27  ;;  %p417_p1 = scmp.lt.u32.totalorder %s413_s27, %s650_s1 }
   0x8   :  { %p419_p2 = pnand %p417_p1, %p414_p0 }
   0xa   :  { %422 = shalt.err (!%p419_p2)
}
   0xb   :  { %s423_s8 = scalar_lea.vmem %s32_s22, 128  ;;  %p428_p4 = scmp.lt.s32.totalorder %s32_s22, %s32_s22 }
   0xc   :  { %p424_p3 = scmp.ne.s32.totalorder %s32_s22, %s423_s8  ;;  %p429_p5 = scmp.lt.s32.totalorder %s423_s8, %s423_s8 }
   0xe   :  { %p430_p6 = por %p429_p5, %p428_p4 }
  0x10   :  { %p431_p7 = pnand %p430_p6, %p424_p3 }
  0x12   :  { %434 = shalt.err (!%p431_p7)
}
  0x13   :  { %34 = dma.hbm_to_vmem [thread:$0]  %s650_s1, 128, %s32_s22, [#allocation6]  }
  0x14   :  { %s435_s13 = scalar_lea.hbm %s649_s0, 64 }
  0x15   :  { %p436_p8 = scmp.ne.s32.totalorder %s649_s0, %s435_s13  ;;  %p439_p9 = scmp.lt.u32.totalorder %s435_s13, %s649_s0 }
  0x17   :  { %p441_p10 = pnand %p439_p9, %p436_p8 }
  0x19   :  { %444 = shalt.err (!%p441_p10)
}
  0x1a   :  { %s445_s18 = scalar_lea.vmem %s22_s24, 64  ;;  %p450_p12 = scmp.lt.s32.totalorder %s22_s24, %s22_s24 }
  0x1b   :  { %p446_p11 = scmp.ne.s32.totalorder %s22_s24, %s445_s18  ;;  %p451_p13 = scmp.lt.s32.totalorder %s445_s18, %s445_s18 }
  0x1d   :  { %p452_p0 = por %p451_p13, %p450_p12 }
  0x1f   :  { %p453_p1 = pnand %p452_p0, %p446_p11 }
  0x21   :  { %456 = shalt.err (!%p453_p1)
}
  0x22   :  { %24 = dma.hbm_to_vmem [thread:$0]  %s649_s0, 64, %s22_s24, [#allocation3]  }
  0x23   :  { %s533_s20 = smov [#allocation7]   ;;  %s457_s25 = scalar_lea.hbm %s651_s2, 256 }
  0x24   :  { %s40_s21 = sshll.u32 %s533_s20, 4  ;;  %p458_p2 = scmp.ne.s32.totalorder %s651_s2, %s457_s25  ;;  %s41_s21 = int_to_ptr.vmem [resolvable:$true] %s40_s21 }
  0x25   :  { %p461_p3 = scmp.lt.u32.totalorder %s457_s25, %s651_s2 }
  0x27   :  { %p463_p4 = pnand %p461_p3, %p458_p2 }
  0x29   :  { %466 = shalt.err (!%p463_p4)
}
  0x2a   :  { %s467_s30 = scalar_lea.vmem %s41_s21, 256  ;;  %p472_p6 = scmp.lt.s32.totalorder %s41_s21, %s41_s21 }
  0x2b   :  { %p468_p5 = scmp.ne.s32.totalorder %s41_s21, %s467_s30  ;;  %p473_p7 = scmp.lt.s32.totalorder %s467_s30, %s467_s30 }
  0x2d   :  { %p474_p8 = por %p473_p7, %p472_p6 }
  0x2f   :  { %p475_p9 = pnand %p474_p8, %p468_p5 }
  0x31   :  { %478 = shalt.err (!%p475_p9)
}
  0x32   :  { %s534_s0 = smov 64   ;;  %s535_s24 = smov 4  }
  0x33   :  { %46 = dma.hbm_to_vmem [thread:$0]  %s651_s2, 256, %s41_s21, [#allocation6], %s534_s0, %s534_s0, %s535_s24  }
  0x34   :  { %s536_s9 = smov [#allocation8]   ;;  %s479_s13 = scalar_lea.hbm %s653_s4, 512 }
  0x35   :  { %s54_s10 = sshll.u32 %s536_s9, 4  ;;  %p480_p10 = scmp.ne.s32.totalorder %s653_s4, %s479_s13  ;;  %s55_s10 = int_to_ptr.vmem [resolvable:$true] %s54_s10 }
  0x36   :  { %p483_p11 = scmp.lt.u32.totalorder %s479_s13, %s653_s4 }
  0x38   :  { %p485_p12 = pnand %p483_p11, %p480_p10 }
  0x3a   :  { %488 = shalt.err (!%p485_p12)
}
  0x3b   :  { %s489_s18 = scalar_lea.vmem %s55_s10, 512  ;;  %p494_p0 = scmp.lt.s32.totalorder %s55_s10, %s55_s10 }
  0x3c   :  { %p490_p13 = scmp.ne.s32.totalorder %s55_s10, %s489_s18  ;;  %p495_p1 = scmp.lt.s32.totalorder %s489_s18, %s489_s18 }
  0x3e   :  { %p496_p2 = por %p495_p1, %p494_p0 }
  0x40   :  { %p497_p3 = pnand %p496_p2, %p490_p13 }
  0x42   :  { %500 = shalt.err (!%p497_p3)
}
  0x43   :  { %60 = dma.hbm_to_vmem [thread:$0]  %s653_s4, 512, %s55_s10, [#allocation9], %s534_s0, %s534_s0, %s535_s24  }
  0x44   :  { %523 = dma.done.wait [#allocation3], 64  }
  0x45   :  { %524 = vsyncadd [#allocation3], 4294967232 }
  0x46   :  { %525 = dma.done.wait [#allocation6], 384  }
  0x47   :  { %526 = vsyncadd [#allocation6], 4294966912 }
  0x48   :  { %527 = dma.done.wait [#allocation9], 512  }
  0x49   :  { %528 = vsyncadd [#allocation9], 4294966784  ;;  %v537_v0 = vmov 0.0   ;;  %vm538_vm0 = vmmov 0   ;;  %v407_v1 = vld [vmem:[#allocation7] sm:$0xff]   ;;  %v408_v2 = vld [vmem:[#allocation7 + $0x8] sm:$0xff]  }
  0x4a   :  { %366 = vmatprep.subr.bf16.mxu0 %v537_v0  ;;  %370 = vmatprep.mubr.msk.bf16.mxu0 %vm538_vm0, %v537_v0  ;;  %v77_v3 = vld [vmem:[#allocation5] sm:$0xff]  ;;  %vm96_vm1 = vcmask 261120   ;;  %vm151_vm2 = vcmask 1043456   ;;  %v76_v11 = vld [vmem:[#allocation2] sm:$0xf]  ;;  %vm147_vm3 = vcmask 64512  }
  0x4b   :  { %374 = vmatprep.subr.bf16.mxu1 %v537_v0  ;;  %376 = vmatprep.mubr.msk.bf16.mxu1 %vm538_vm0, %v537_v0  ;;  %v83_v4 = vpack.c.bf16 %v77_v3, %v77_v3  ;;  %v409_v12 = vld [vmem:[#allocation8] sm:$0xff]   ;;  %v410_v13 = vld [vmem:[#allocation8 + $0x8] sm:$0xff]   ;;  %v411_v14 = vld [vmem:[#allocation8 + $0x10] sm:$0xff]   ;;  %vm230_vm4 = vcmask 523264   ;;  %s539_s21 = smov [#allocation10]  }
  0x4c   :  { %367 = vmatpush3.bf16.msra.mxu0 %v407_v1  ;;  %v412_v15 = vld [vmem:[#allocation8 + $0x18] sm:$0xff]   ;;  %v345_v16 = vld [vmem:[%s652_s3] ss:$0 sm:$0xff]  ;;  %s331_s22 = sshll.u32 %s539_s21, 4  ;;  %s332_s22 = int_to_ptr.vmem [resolvable:$true] %s331_s22 }
  0x4d   :  { %368 = vmatprep.subr.bf16.mxu0 %v537_v0  ;;  %v352_v30 = vld [vmem:[%s654_s5] ss:$0 sm:$0xff]  ;;  %s501_s23 = scalar_lea.vmem %s332_s22, 128  ;;  %p506_p5 = scmp.lt.s32.totalorder %s332_s22, %s332_s22 }
  0x4e   :  { %p502_p4 = scmp.ne.s32.totalorder %s332_s22, %s501_s23  ;;  %p507_p6 = scmp.lt.s32.totalorder %s501_s23, %s501_s23 }
  0x50   :  { %369 = vmatpush3.bf16.msra.mxu0 %v408_v2  ;;  %p508_p7 = por %p507_p6, %p506_p5 }
  0x51   :  { %392 = vmatprep.subr.bf16.mxu0 %v537_v0 }
  0x52   :  { %p509_p8 = pnand %p508_p7, %p502_p4 }
  0x53   :  { %371 = vmatmul.mubr.msk.bf16.vlgmr.msra.gmra.mrb[0].mxu0 %vm96_vm1, %v83_v4 }
  0x54   :  { %394 = vmatprep.mubr.msk.bf16.mxu0 %vm538_vm0, %v537_v0 }
 0x126   :  { %v134_v5 = vpop.f32.mrb[0].mxu0 }
 0x127   :  { %v140_v6 = vpack.c.bf16 %v134_v5, %v134_v5  ;;  %v372_v7 = vpop.f32.mrb[1].mxu0 }
 0x128   :  { %v137_v8 = vpop.f32.mrb[2].mxu0 }
 0x129   :  { %v373_v9 = vpop.f32.mrb[3].mxu0  ;;  %v153_v10 = vsel %vm151_vm2, %v140_v6, 0 }
 0x12a   :  { %375 = vmatpush3.bf16.msra.mxu1 %v153_v10 }
 0x12b   :  { %380 = vmatprep.subr.bf16.mxu1 %v537_v0 }
 0x12d   :  { %377 = vmatmul.mubr.msk.bf16.vlgmr.msra.gmra.mrb[0].mxu1 %vm147_vm3, %v76_v11 }
 0x12e   :  { %381 = vmatpush3.bf16.msra.mxu1 %v409_v12  ;;  %388 = vmatprep.mubr.msk.bf16.mxu1 %vm538_vm0, %v537_v0 }
 0x12f   :  { %382 = vmatprep.subr.bf16.mxu1 %v537_v0 }
 0x132   :  { %383 = vmatpush3.bf16.msra.mxu1 %v410_v13 }
 0x133   :  { %384 = vmatprep.subr.bf16.mxu1 %v537_v0 }
 0x136   :  { %385 = vmatpush3.bf16.msra.mxu1 %v411_v14 }
 0x137   :  { %386 = vmatprep.subr.bf16.mxu1 %v537_v0 }
 0x13a   :  { %387 = vmatpush3.bf16.msra.mxu1 %v412_v15 }
 0x200   :  { %v189_v17 = vpop.f32.mrb[0].mxu1 }
 0x201   :  { %v190_v18 = vadd.f32 %v345_v16, %v189_v17  ;;  %v378_v19 = vpop.f32.mrb[1].mxu1 }
 0x202   :  { %v192_v20 = vpop.f32.mrb[2].mxu1 }
 0x203   :  { %v195_v21 = vmax.f32 %v190_v18, 0.0  ;;  %v379_v22 = vpop.f32.mrb[3].mxu1 }
 0x205   :  { %v205_v23 = vpack.c.bf16 %v195_v21, %v195_v21 }
 0x207   :  { %389 = vmatmul.mubr.msk.bf16.vlgmr.msra.gmra.mrb[4].mxu1 %vm230_vm4, %v205_v23 }
 0x2da   :  { %v268_v24 = vpop.f32.mrb[4].mxu1 }
 0x2db   :  { %v274_v25 = vpack.c.bf16 %v268_v24, %v268_v24  ;;  %v390_v26 = vpop.f32.mrb[5].mxu1 }
 0x2dc   :  { %v271_v27 = vpop.f32.mrb[6].mxu1 }
 0x2dd   :  { %v282_v28 = vsel %vm151_vm2, %v274_v25, 0  ;;  %v391_v29 = vpop.f32.mrb[7].mxu1 }
 0x2de   :  { %393 = vmatpush3.bf16.msra.mxu0 %v282_v28 }
 0x2e1   :  { %395 = vmatmul.mubr.msk.bf16.vlgmr.msra.gmra.mrb[4].mxu0 %vm147_vm3, %v76_v11 }
 0x3b4   :  { %v318_v31 = vpop.f32.mrb[4].mxu0 }
 0x3b5   :  { %v319_v32 = vadd.f32 %v352_v30, %v318_v31  ;;  %v396_v33 = vpop.f32.mrb[5].mxu0 }
 0x3b6   :  { %v321_v34 = vpop.f32.mrb[6].mxu0 }
 0x3b7   :  { %324 = vst [vmem:[#allocation10] sm:$0xff] %v319_v32  ;;  %v397_v35 = vpop.f32.mrb[7].mxu0 }
 0x3b8   :  { %512 = shalt.err (!%p509_p8)
}
 0x3b9   :  { %s513_s5 = scalar_lea.hbm %s655_s6, 128 }
 0x3ba   :  { %p514_p9 = scmp.ne.s32.totalorder %s655_s6, %s513_s5  ;;  %p517_p10 = scmp.lt.u32.totalorder %s513_s5, %s655_s6 }
 0x3bc   :  { %p519_p11 = pnand %p517_p10, %p514_p9 }
 0x3be   :  { %522 = shalt.err (!%p519_p11)
}
 0x3bf   :  { %334 = dma.vmem_to_hbm [thread:$0]  %s332_s22, 128, %s655_s6, [#allocation4]  }
 0x3c0   :  { %529 = dma.done.wait [#allocation4], 128  }
 0x3c1   :  { %530 = vsyncadd [#allocation4], 4294967168 }
 0x3c2   :  { %338 = vsyncpa [#allocation3], 1 }
 0x3c3   :  { %339 = vsyncpa [#allocation6], 1 }
 0x3c4   :  { %340 = vsyncpa [#allocation9], 1 }
 0x3c5   :  { %341 = vsyncpa [#allocation4], 1 }

</bundles_post_ra>
